<compile_context>
chip_gen: v5e
topology: v5e:2x2
jax: 0.10.0
libtpu: 0.0.40
codegen_flags: <defaults>
</compile_context>

<pallas_src>
import jax
import jax.numpy as jnp
from jax.experimental import pallas as pl
from jax.experimental.pallas import tpu as pltpu


def _round_up(v: int, m: int) -> int:
    return (v + m - 1) // m * m


def _wl_layer_kernel(a_ref, x_ref, o_ref, acc_ref):
    """One row-tile x contraction-tile step of  o = A_half @ x  (f32 accum)."""
    k = pl.program_id(1)

    @pl.when(k == 0)
    def _():
        acc_ref[...] = jnp.zeros_like(acc_ref)

    acc_ref[...] += jnp.dot(
        a_ref[...], x_ref[...], preferred_element_type=jnp.float32
    )

    @pl.when(k == pl.num_programs(1) - 1)
    def _():
        o_ref[...] = acc_ref[...].astype(o_ref.dtype)


def wl_continuous(
    x: jax.Array,
    edge_index: jax.Array,
    num_layers: int,
    *,
    compute_dtype=jnp.bfloat16,
) -> jax.Array:
    """Apply `num_layers` continuous-WL convolutions to node features x.

    x:          [N, F] float32 node features.
    edge_index: [2, E] int32, edge_index[0]=source, edge_index[1]=target (PyG).
    """
    n, f = x.shape
    src, tgt = edge_index[0], edge_index[1]

    # ---- glue (plain JAX): dense row-normalized adjacency, with the WL update
    # folded in:  A_half = 0.5 * (I + A_norm)  ->  x' = A_half @ x.
    adj = jnp.zeros((n, n), dtype=jnp.float32).at[tgt, src].add(1.0)
    deg = adj.sum(axis=1, keepdims=True)
    adj_norm = adj / jnp.maximum(deg, 1.0)  # isolated nodes aggregate to 0
    a_half = 0.5 * (jnp.eye(n, dtype=jnp.float32) + adj_norm)

    # ---- padding: F -> multiple of 128 (lane-dense output), N -> multiple of
    # the MXU tile.  Padded rows/cols are zero so they contribute nothing.
    tile = 256 if n >= 256 else _round_up(n, 8)
    n_pad = _round_up(n, tile)
    f_pad = _round_up(f, 128)

    a_half = jnp.pad(a_half, ((0, n_pad - n), (0, n_pad - n))).astype(compute_dtype)
    x_pad = jnp.pad(x.astype(jnp.float32), ((0, n_pad - n), (0, f_pad - f)))

    grid = (n_pad // tile, n_pad // tile)

    in_item = jnp.dtype(compute_dtype).itemsize
    # double-buffered adj + x tiles, double-buffered f32 out tile, f32 accumulator
    vmem_need = (
        2 * tile * tile * in_item
        + 2 * tile * f_pad * in_item
        + 2 * tile * f_pad * 4
        + tile * f_pad * 4
    )
    vmem_limit = int(min(32 * 1024 * 1024, max(4 * vmem_need, 4 * 1024 * 1024)))

    cost = pl.CostEstimate(
        flops=2 * n_pad * n_pad * f_pad,
        transcendentals=0,
        bytes_accessed=n_pad * n_pad * in_item + n_pad * f_pad * (in_item + 4),
    )

    layer = pl.pallas_call(
        _wl_layer_kernel,
        out_shape=jax.ShapeDtypeStruct((n_pad, f_pad), jnp.float32),
        grid_spec=pltpu.PrefetchScalarGridSpec(
            num_scalar_prefetch=0,
            grid=grid,
            in_specs=[
                pl.BlockSpec((tile, tile), lambda i, k: (i, k)),
                pl.BlockSpec((tile, f_pad), lambda i, k: (k, 0)),
            ],
            out_specs=pl.BlockSpec((tile, f_pad), lambda i, k: (i, 0)),
            scratch_shapes=[pltpu.VMEM((tile, f_pad), jnp.float32)],
        ),
        compiler_params=pltpu.CompilerParams(
            dimension_semantics=("parallel", "arbitrary"),
            vmem_limit_bytes=vmem_limit,
        ),
        cost_estimate=cost,
    )

    # Layer loop ping-pongs x through HBM; each layer is one tiled matmul call.
    for _ in range(num_layers):
        x_pad = layer(a_half, x_pad.astype(compute_dtype))

    return x_pad[:n, :f]


def wl_continuous_ref(x, edge_index, num_layers):
    """Pure-JAX f32 reference matching PyG WLConvContinuous semantics."""
    n = x.shape[0]
    src, tgt = edge_index[0], edge_index[1]
    adj = jnp.zeros((n, n), dtype=jnp.float32).at[tgt, src].add(1.0)
    deg = adj.sum(axis=1, keepdims=True)
    adj_norm = adj / jnp.maximum(deg, 1.0)
    for _ in range(num_layers):
        x = 0.5 * (x + adj_norm @ x)
    return x


def wl_continuous_ref_lowp(x, edge_index, num_layers, compute_dtype=jnp.bfloat16):
    """Reference with the same bf16 matmul inputs / f32 accumulation as the kernel."""
    n = x.shape[0]
    src, tgt = edge_index[0], edge_index[1]
    adj = jnp.zeros((n, n), dtype=jnp.float32).at[tgt, src].add(1.0)
    deg = adj.sum(axis=1, keepdims=True)
    adj_norm = adj / jnp.maximum(deg, 1.0)
    a_half = (0.5 * (jnp.eye(n, dtype=jnp.float32) + adj_norm)).astype(compute_dtype)
    for _ in range(num_layers):
        x = jnp.dot(a_half, x.astype(compute_dtype),
                    preferred_element_type=jnp.float32)
    return x


if __name__ == "__main__":
    key = jax.random.PRNGKey(0)
    k_x, k_src, k_tgt = jax.random.split(key, 3)

    N = 16          # number of graph nodes
    F = 32          # node feature dimension
    E = 48          # number of directed edges
    NUM_LAYERS = 2  # num_layers in WLContinous

    x = jax.random.normal(k_x, (N, F), dtype=jnp.float32)
    edge_index = jnp.stack([
        jax.random.randint(k_src, (E,), 0, N, dtype=jnp.int32),
        jax.random.randint(k_tgt, (E,), 0, N, dtype=jnp.int32),
    ], axis=0)

    out = wl_continuous(x, edge_index, NUM_LAYERS)
    out = jax.block_until_ready(out)
    assert out.shape == (N, F)

    # Tight check vs a reference using the same bf16 operands / f32 accumulation.
    ref_lowp = wl_continuous_ref_lowp(x, edge_index, NUM_LAYERS)
    assert jnp.allclose(out, ref_lowp, atol=2e-2, rtol=2e-2), "mismatch vs bf16 ref"

    # Looser check vs the exact f32 reference (bf16 adjacency costs ~3 digits).
    ref_f32 = wl_continuous_ref(x, edge_index, NUM_LAYERS)
    assert jnp.allclose(out, ref_f32, atol=5e-2, rtol=5e-2), "mismatch vs f32 ref"

    print("KERNEL_OK")
</pallas_src>

<mosaic_0001>
module attributes {stable_mosaic.version = 11 : i64} {
  func.func @_wl_layer_kernel(%arg0: i32, %arg1: i32, %arg2: memref<16x16xbf16, #tpu.memory_space<vmem>>, %arg3: memref<16x128xbf16, #tpu.memory_space<vmem>>, %arg4: memref<16x128xf32, #tpu.memory_space<vmem>>, %arg5: memref<16x128xf32, #tpu.memory_space<vmem>>) attributes {dimension_semantics = [#tpu.dimension_semantics<parallel>, #tpu.dimension_semantics<arbitrary>], iteration_bounds = array<i64: 1, 1>, scalar_prefetch = 0 : i64, scratch_operands = 1 : i64, tpu.core_type = #tpu.core_type<tc>, window_params = [{transform_indices = @transform_0, window_bounds = array<i64: 16, 16>}, {transform_indices = @transform_1, window_bounds = array<i64: 16, 128>}, {transform_indices = @transform_2, window_bounds = array<i64: 16, 128>}]} {
    %c0_i32 = arith.constant 0 : i32
    %0 = arith.cmpi eq, %arg1, %c0_i32 : i32
    %1 = arith.extui %0 : i1 to i32
    %c0_i32_0 = arith.constant 0 : i32
    %2 = arith.cmpi ne, %1, %c0_i32_0 : i32
    scf.if %2 {
      %cst_10 = arith.constant 0.000000e+00 : f32
      %12 = vector.broadcast %cst_10 : f32 to vector<16x128xf32>
      %c0_11 = arith.constant 0 : index
      %c0_12 = arith.constant 0 : index
      %13 = vector.load %arg5[%c0_11, %c0_12] : memref<16x128xf32, #tpu.memory_space<vmem>>, vector<16x128xf32>
      tpu.vector_store %arg5[%c0_11, %c0_12], %12 {strides = array<i32>} : memref<16x128xf32, #tpu.memory_space<vmem>>, vector<16x128xf32>,
    } else {
    }
    %c0 = arith.constant 0 : index
    %c0_1 = arith.constant 0 : index
    %3 = vector.load %arg5[%c0, %c0_1] : memref<16x128xf32, #tpu.memory_space<vmem>>, vector<16x128xf32>
    %c0_2 = arith.constant 0 : index
    %c0_3 = arith.constant 0 : index
    %4 = vector.load %arg2[%c0_2, %c0_3] : memref<16x16xbf16, #tpu.memory_space<vmem>>, vector<16x16xbf16>
    %c0_4 = arith.constant 0 : index
    %c0_5 = arith.constant 0 : index
    %5 = vector.load %arg3[%c0_4, %c0_5] : memref<16x128xbf16, #tpu.memory_space<vmem>>, vector<16x128xbf16>
    %cst = arith.constant dense<0.000000e+00> : vector<16x128xf32>
    %6 = tpu.matmul %4, %5, %cst {dimension_numbers = #tpu.dot_dimension_numbers<[1], [0], [0], [1], [0, 0, 1, 1], [], []>} : vector<16x16xbf16>, vector<16x128xbf16>, vector<16x128xf32> -> vector<16x128xf32>
    %7 = arith.addf %3, %6 : vector<16x128xf32>
    %c0_6 = arith.constant 0 : index
    %c0_7 = arith.constant 0 : index
    %8 = vector.load %arg5[%c0_6, %c0_7] : memref<16x128xf32, #tpu.memory_space<vmem>>, vector<16x128xf32>
    tpu.vector_store %arg5[%c0_6, %c0_7], %7 {strides = array<i32>} : memref<16x128xf32, #tpu.memory_space<vmem>>, vector<16x128xf32>,
    %c0_i32_8 = arith.constant 0 : i32
    %9 = arith.cmpi eq, %arg1, %c0_i32_8 : i32
    %10 = arith.extui %9 : i1 to i32
    %c0_i32_9 = arith.constant 0 : i32
    %11 = arith.cmpi ne, %10, %c0_i32_9 : i32
    scf.if %11 {
      %c0_10 = arith.constant 0 : index
      %c0_11 = arith.constant 0 : index
      %12 = vector.load %arg5[%c0_10, %c0_11] : memref<16x128xf32, #tpu.memory_space<vmem>>, vector<16x128xf32>
      %c0_12 = arith.constant 0 : index
      %c0_13 = arith.constant 0 : index
      %13 = vector.load %arg4[%c0_12, %c0_13] : memref<16x128xf32, #tpu.memory_space<vmem>>, vector<16x128xf32>
      tpu.vector_store %arg4[%c0_12, %c0_13], %12 {strides = array<i32>} : memref<16x128xf32, #tpu.memory_space<vmem>>, vector<16x128xf32>,
    } else {
    }
    return
  }
  func.func @transform_0(%arg0: i32, %arg1: i32) -> (i32, i32) {
    %c0_i32 = arith.constant 0 : i32
    return %arg0, %arg1 : i32, i32
  }
  func.func @transform_1(%arg0: i32, %arg1: i32) -> (i32, i32) {
    %c0_i32 = arith.constant 0 : i32
    %c0_i32_0 = arith.constant 0 : i32
    return %arg1, %c0_i32 : i32, i32
  }
  func.func @transform_2(%arg0: i32, %arg1: i32) -> (i32, i32) {
    %c0_i32 = arith.constant 0 : i32
    %c0_i32_0 = arith.constant 0 : i32
    return %arg0, %c0_i32 : i32, i32
  }
}

</mosaic_0001>

<bundles_post_ra>
// kernel: tpu_custom_call.1
= control target key start
LH: loop header
LB: loop body
LE: loop exit
PB: predicated region body
PF: predicated region fallthrough
CT: control target
= control target key end

     0   :  { %7 = vsyncpa [#allocation4], 0  ;;  %s244_s0 = inlined_call_operand.hbm [shape: bf16[16,16], index: 0, kind: input, shape index: {}]   ;;  %s245_s1 = inlined_call_operand.hbm [shape: bf16[16,128], index: 1, kind: input, shape index: {}]   ;;  %s246_s2 = inlined_call_operand.hbm [shape: f32[16,128], index: 2, kind: output, shape index: {}]  }
   0x1   :  { %8 = vsyncpa [#allocation7], 0 }
   0x2   :  { %9 = vsyncpa [#allocation5], 0  ;;  %s14_s11 = sshll.u32 %s244_s0, 4  ;;  %s213_s12 = smov [#allocation3]   ;;  %s15_s11 = int_to_ptr.hbm [resolvable:$true] %s14_s11 }
   0x3   :  { %s16_s13 = sshll.u32 %s213_s12, 4  ;;  %s27_s16 = sshll.u32 %s245_s1, 4  ;;  %s17_s13 = int_to_ptr.vmem [resolvable:$true] %s16_s13  ;;  %s28_s16 = int_to_ptr.hbm [resolvable:$true] %s27_s16 }
   0x4   :  { %s214_s17 = smov 64   ;;  %s215_s18 = smov 4  }
   0x5   :  { %22 = dma.hbm_to_vmem [thread:$0]  %s15_s11, 128, %s17_s13, [#allocation4], %s214_s17, %s214_s17, %s215_s18  }
   0x6   :  { %s216_s19 = smov [#allocation6]  }
   0x7   :  { %s29_s20 = sshll.u32 %s216_s19, 4  ;;  %s30_s20 = int_to_ptr.vmem [resolvable:$true] %s29_s20 }
   0x8   :  { %35 = dma.hbm_to_vmem [thread:$0]  %s28_s16, 128, %s30_s20, [#allocation7], %s214_s17, %s214_s17, %s215_s18  }
   0x9   :  { %207 = dma.done.wait [#allocation4], 128  }
   0xa   :  { %208 = vsyncadd [#allocation4], 4294967168 }
   0xb   :  { %209 = dma.done.wait [#allocation7], 128  }
   0xc   :  { %210 = vsyncadd [#allocation7], 4294967168  ;;  %v127_v0 = vld [vmem:[#allocation6] sm:$0xff]  ;;  %v126_v1 = vld [vmem:[#allocation3] sm:$0xff]  ;;  %vm68_vm0 = vcmask 130048   ;;  %s217_s0 = smov [#allocation8]  }
   0xd   :  { %79 = vmatpush.bf16.msra.mxu0 %v127_v0  ;;  %s101_s1 = sshll.u32 %s217_s0, 4  ;;  %s103_s23 = sshll.u32 %s246_s2, 4  ;;  %s102_s1 = int_to_ptr.vmem [resolvable:$true] %s101_s1  ;;  %s104_s23 = int_to_ptr.hbm [resolvable:$true] %s103_s23 }
   0xe   :  { %s218_s24 = smov 128   ;;  %s219_s25 = smov 8  }
  0x10   :  { %125 = vmatmul.msk.bf16.vlgmr.msra.gmra.mxu0 %vm68_vm0, %v126_v1 }
  0x8d   :  { %v81_v2 = vpop.f32.mrf.mxu0 }
  0x8e   :  { %95 = vst [vmem:[#allocation8] sm:$0xff] %v81_v2 }
  0x95   :  { %v83_v3 = vpop.f32.mrf.mxu0 }
  0x96   :  { %96 = vst [vmem:[#allocation8 + $0x8] sm:$0xff] %v83_v3 }
  0x97   :  { %109 = dma.vmem_to_hbm [thread:$0]  %s102_s1, 256, %s104_s23, [#allocation5], %s218_s24, %s218_s24, %s219_s25  }
  0x98   :  { %211 = dma.done.wait [#allocation5], 256  }
  0x99   :  { %212 = vsyncadd [#allocation5], 4294967040 }
  0x9a   :  { %114 = vsyncpa [#allocation4], 1 }
  0x9b   :  { %115 = vsyncpa [#allocation7], 1 }
  0x9c   :  { %116 = vsyncpa [#allocation5], 1 }

</bundles_post_ra>
